<compile_context>
chip_gen: v6e
topology: v6e:2x2x1
jax: 0.10.0
libtpu: 0.0.40
codegen_flags: <defaults>
</compile_context>

<pallas_src>
import functools

import jax
import jax.numpy as jnp
from jax.experimental import pallas as pl
from jax.experimental.pallas import tpu as pltpu


def gated_multihead_attn_kernel(x_ref, wab_ref, bab_ref, wc_ref, bc_ref,
                                a_out_ref, *, hd, c_is_one):
    """One N-tile of A = scale * sum_h Lc_h(tanh(La_h(x)) * sigmoid(Lb_h(x)))."""
    x = x_ref[...]                                              # (TN, L), native dtype
    # Fused a|b projection for all heads: (TN, L) @ (L, 2*H*D) on the MXU,
    # f32 accumulation, single bias broadcast.
    z = jnp.dot(x, wab_ref[...], preferred_element_type=jnp.float32) + bab_ref[...]
    # Gating in f32 (tanh / sigmoid go to the EUP).  `hd` is a lane-aligned
    # static split whenever H*D is a multiple of 128.
    gated = jnp.tanh(z[:, :hd]) * jax.nn.sigmoid(z[:, hd:])     # (TN, H*D) f32

    if c_is_one:
        # n_classes == 1: an (H*D, 1) matmul would light 1 of 128/256 MXU
        # output lanes; do a broadcast-multiply + lane reduction instead.
        acc = jnp.sum(gated * wc_ref[...], axis=-1, keepdims=True) + bc_ref[...]
    else:
        acc = jnp.dot(gated.astype(wc_ref.dtype), wc_ref[...],
                      preferred_element_type=jnp.float32) + bc_ref[...]

    # NOTE: with C == 1 the output block is 1 lane wide (masked stores), but it
    # is a tiny (TN, 1) slab so the store tail is negligible.
    a_out_ref[...] = acc.astype(a_out_ref.dtype)


def _pack_params(params, compute_dtype):
    """Pack per-head weights into fused, lane-dense operands.

    Wa, Wb : (H, L, D) -> Wab (L, 2*H*D), head-major columns
    ba, bb : (H, D)    -> bab (1, 2*H*D)
    Wc     : (H, D, C) -> (H*D, C)   [or (1, H*D) when C == 1]
    The 1/(H*temperature) scale is folded into Wc / bc.
    """
    H, L, D = params["Wa"].shape
    C = params["Wc"].shape[-1]
    HD = H * D

    wab = jnp.concatenate(
        [params["Wa"].transpose(1, 0, 2).reshape(L, HD),
         params["Wb"].transpose(1, 0, 2).reshape(L, HD)],
        axis=1).astype(compute_dtype)                           # (L, 2*HD)
    bab = jnp.concatenate(
        [params["ba"].reshape(HD), params["bb"].reshape(HD)]
    ).reshape(1, 2 * HD).astype(jnp.float32)

    scale = (1.0 / (H * params["temperature"][0])).astype(jnp.float32)
    if C == 1:
        wc = (params["Wc"][..., 0].reshape(1, HD) * scale).astype(jnp.float32)
        bc = (params["bc"].sum(axis=0).reshape(1, 1) * scale).astype(jnp.float32)
    else:
        wc = (params["Wc"].reshape(HD, C) * scale).astype(compute_dtype)
        bc = (params["bc"].sum(axis=0).reshape(1, C) * scale).astype(jnp.float32)
    return wab, bab, wc, bc


def attn_net_gated_multihead(x, params, only_A=False, *, tile_n=512):
    """JAX wrapper; params: Wa/Wb (H,L,D), ba/bb (H,D), Wc (H,D,C), bc (H,C),
    temperature (1,).  Returns (A, x) like the torch module (or A if only_A)."""
    N, L = x.shape
    H, _, D = params["Wa"].shape
    C = params["Wc"].shape[-1]
    HD = H * D

    wab, bab, wc, bc = _pack_params(params, x.dtype)

    # Tile the bag dimension so x streams (double-buffered) through VMEM while
    # the small fused weights stay resident.
    tn = N if N <= tile_n else max(8, (tile_n // 8) * 8)
    num_tiles = pl.cdiv(N, tn)

    kernel = functools.partial(gated_multihead_attn_kernel,
                               hd=HD, c_is_one=(C == 1))

    # Rough VMEM budget (double-buffered x/out tiles + resident weights +
    # f32 intermediates) with 2x headroom, clamped for v7x's smaller VMEM.
    xb = jnp.dtype(x.dtype).itemsize
    vmem_bytes = (
        2 * tn * L * xb + 2 * tn * C * xb
        + wab.size * jnp.dtype(wab.dtype).itemsize
        + wc.size * jnp.dtype(wc.dtype).itemsize
        + (bab.size + bc.size) * 4
        + tn * (3 * HD + C) * 4
    )
    vmem_limit = int(min(max(2 * vmem_bytes, 32 * 1024 * 1024),
                         96 * 1024 * 1024))

    grid_spec = pltpu.PrefetchScalarGridSpec(
        num_scalar_prefetch=0,
        grid=(num_tiles,),
        in_specs=[
            pl.BlockSpec((tn, L), lambda i: (i, 0)),        # streamed x tile
            pl.BlockSpec((L, 2 * HD), lambda i: (0, 0)),    # resident fused Wab
            pl.BlockSpec((1, 2 * HD), lambda i: (0, 0)),    # resident fused bias
            pl.BlockSpec(tuple(wc.shape), lambda i: (0, 0)),  # resident Wc (scaled)
            pl.BlockSpec(tuple(bc.shape), lambda i: (0, 0)),  # resident bc (scaled)
        ],
        out_specs=pl.BlockSpec((tn, C), lambda i: (i, 0)),
    )

    A = pl.pallas_call(
        kernel,
        out_shape=jax.ShapeDtypeStruct((N, C), x.dtype),
        grid_spec=grid_spec,
        compiler_params=pltpu.CompilerParams(
            dimension_semantics=("parallel",),   # rows independent -> both TCs on v7x
            vmem_limit_bytes=vmem_limit,
        ),
    )(x, wab, bab, wc, bc)

    if only_A:
        return A
    return A, x


def init_params(key, L, D, H, n_classes):
    """Deterministic synthetic parameter init (shapes match the torch module)."""
    keys = jax.random.split(key, 6)
    scale_a = 1.0 / jnp.sqrt(jnp.float32(L))
    scale_c = 1.0 / jnp.sqrt(jnp.float32(D))
    params = {
        # torch Linear(L, D) weight is (D, L); stored transposed (L, D) per head.
        "Wa": jax.random.uniform(keys[0], (H, L, D), jnp.float32, -scale_a, scale_a),
        "ba": jax.random.uniform(keys[1], (H, D), jnp.float32, -scale_a, scale_a),
        "Wb": jax.random.uniform(keys[2], (H, L, D), jnp.float32, -scale_a, scale_a),
        "bb": jax.random.uniform(keys[3], (H, D), jnp.float32, -scale_a, scale_a),
        "Wc": jax.random.uniform(keys[4], (H, D, n_classes), jnp.float32, -scale_c, scale_c),
        "bc": jax.random.uniform(keys[5], (H, n_classes), jnp.float32, -scale_c, scale_c),
        "temperature": jnp.ones((1,), jnp.float32),   # nn.Parameter(torch.ones(1))
    }
    # TODO(synk): Dropout is defined in the torch __init__ but never applied in forward(); omitted.
    return params


def reference_forward(x, params):
    """Pure-JAX reference mirroring the torch forward."""
    H = params["Wa"].shape[0]
    A = 0.0
    for h in range(H):
        a = jnp.tanh(x @ params["Wa"][h] + params["ba"][h])
        b = jax.nn.sigmoid(x @ params["Wb"][h] + params["bb"][h])
        A = A + ((a * b) @ params["Wc"][h] + params["bc"][h])
    A = A / H
    A = A / params["temperature"][0]
    return A, x


if __name__ == "__main__":
    key = jax.random.PRNGKey(0)
    kx, kp, kx2, kp2 = jax.random.split(key, 4)

    # Config 1: n_classes == 1 (VPU output-reduction path), 4 N-tiles.
    N, L, D, H, n_classes = 512, 128, 32, 4, 1
    x = jax.random.normal(kx, (N, L), jnp.float32)
    params = init_params(kp, L, D, H, n_classes)
    A, x_out = attn_net_gated_multihead(x, params, tile_n=128)
    A = jax.block_until_ready(A)
    x_out = jax.block_until_ready(x_out)
    A_ref, _ = reference_forward(x, params)
    assert A.shape == (N, n_classes)
    assert jnp.allclose(A, A_ref, atol=1e-4, rtol=1e-4), "mismatch (C=1) vs reference"
    assert jnp.allclose(x_out, x), "passthrough x mismatch"

    # Config 2: n_classes > 1 (fused MXU output projection), only_A path.
    N2, L2, D2, H2, C2 = 256, 64, 32, 4, 4
    x2 = jax.random.normal(kx2, (N2, L2), jnp.float32)
    params2 = init_params(kp2, L2, D2, H2, C2)
    A2 = attn_net_gated_multihead(x2, params2, only_A=True, tile_n=128)
    A2 = jax.block_until_ready(A2)
    A2_ref, _ = reference_forward(x2, params2)
    assert A2.shape == (N2, C2)
    assert jnp.allclose(A2, A2_ref, atol=1e-4, rtol=1e-4), "mismatch (C=4) vs reference"

    print("KERNEL_OK")
</pallas_src>

<mosaic_0001>
module attributes {stable_mosaic.version = 11 : i64} {
  func.func @gated_multihead_attn_kernel(%arg0: i32, %arg1: memref<128x128xf32, #tpu.memory_space<vmem>>, %arg2: memref<128x256xf32, #tpu.memory_space<vmem>>, %arg3: memref<1x256xf32, #tpu.memory_space<vmem>>, %arg4: memref<1x128xf32, #tpu.memory_space<vmem>>, %arg5: memref<1x1xf32, #tpu.memory_space<vmem>>, %arg6: memref<128x1xf32, #tpu.memory_space<vmem>>) attributes {dimension_semantics = [#tpu.dimension_semantics<parallel>], iteration_bounds = array<i64: 4>, scalar_prefetch = 0 : i64, scratch_operands = 0 : i64, tpu.core_type = #tpu.core_type<tc>, window_params = [{transform_indices = @transform_0, window_bounds = array<i64: 128, 128>}, {pipeline_mode = #tpu.pipeline_mode<synchronous>, transform_indices = @transform_1, window_bounds = array<i64: 128, 256>}, {pipeline_mode = #tpu.pipeline_mode<synchronous>, transform_indices = @transform_2, window_bounds = array<i64: 1, 256>}, {pipeline_mode = #tpu.pipeline_mode<synchronous>, transform_indices = @transform_3, window_bounds = array<i64: 1, 128>}, {pipeline_mode = #tpu.pipeline_mode<synchronous>, transform_indices = @transform_4, window_bounds = array<i64: 1, 1>}, {transform_indices = @transform_5, window_bounds = array<i64: 128, 1>}]} {
    %c0 = arith.constant 0 : index
    %c0_0 = arith.constant 0 : index
    %0 = vector.load %arg1[%c0, %c0_0] : memref<128x128xf32, #tpu.memory_space<vmem>>, vector<128x128xf32>
    %c0_1 = arith.constant 0 : index
    %c0_2 = arith.constant 0 : index
    %1 = vector.load %arg2[%c0_1, %c0_2] : memref<128x256xf32, #tpu.memory_space<vmem>>, vector<128x256xf32>
    %cst = arith.constant dense<0.000000e+00> : vector<128x256xf32>
    %2 = tpu.matmul %0, %1, %cst {dimension_numbers = #tpu.dot_dimension_numbers<[1], [0], [0], [1], [0, 0, 1, 1], [], []>} : vector<128x128xf32>, vector<128x256xf32>, vector<128x256xf32> -> vector<128x256xf32>
    %c0_3 = arith.constant 0 : index
    %c0_4 = arith.constant 0 : index
    %3 = vector.load %arg3[%c0_3, %c0_4] : memref<1x256xf32, #tpu.memory_space<vmem>>, vector<1x256xf32>
    %4 = vector.broadcast %3 : vector<1x256xf32> to vector<128x256xf32>
    %5 = arith.addf %2, %4 : vector<128x256xf32>
    %6 = vector.extract_strided_slice %5 {offsets = [0, 0], sizes = [128, 128], strides = [1, 1]} : vector<128x256xf32> to vector<128x128xf32>
    %7 = math.tanh %6 : vector<128x128xf32>
    %8 = vector.extract_strided_slice %5 {offsets = [0, 128], sizes = [128, 128], strides = [1, 1]} : vector<128x256xf32> to vector<128x128xf32>
    %9 = arith.negf %8 : vector<128x128xf32>
    %10 = math.exp %9 : vector<128x128xf32>
    %cst_5 = arith.constant 1.000000e+00 : f32
    %11 = vector.broadcast %cst_5 : f32 to vector<128x128xf32>
    %12 = arith.addf %11, %10 : vector<128x128xf32>
    %13 = arith.divf %11, %12 : vector<128x128xf32>
    %14 = arith.mulf %7, %13 : vector<128x128xf32>
    %c0_6 = arith.constant 0 : index
    %c0_7 = arith.constant 0 : index
    %15 = vector.load %arg4[%c0_6, %c0_7] : memref<1x128xf32, #tpu.memory_space<vmem>>, vector<1x128xf32>
    %16 = vector.broadcast %15 : vector<1x128xf32> to vector<128x128xf32>
    %17 = arith.mulf %14, %16 : vector<128x128xf32>
    %cst_8 = arith.constant dense<0.000000e+00> : vector<128xf32>
    %18 = vector.multi_reduction <add>, %17, %cst_8 [1] : vector<128x128xf32> to vector<128xf32>
    %19 = vector.shape_cast %18 : vector<128xf32> to vector<128x1xf32>
    %c0_9 = arith.constant 0 : index
    %c0_10 = arith.constant 0 : index
    %20 = vector.load %arg5[%c0_9, %c0_10] : memref<1x1xf32, #tpu.memory_space<vmem>>, vector<1x1xf32>
    %21 = vector.broadcast %20 : vector<1x1xf32> to vector<128x1xf32>
    %22 = arith.addf %19, %21 : vector<128x1xf32>
    %c0_11 = arith.constant 0 : index
    %c0_12 = arith.constant 0 : index
    %23 = vector.load %arg6[%c0_11, %c0_12] : memref<128x1xf32, #tpu.memory_space<vmem>>, vector<128x1xf32>
    tpu.vector_store %arg6[%c0_11, %c0_12], %22 {strides = array<i32>} : memref<128x1xf32, #tpu.memory_space<vmem>>, vector<128x1xf32>,
    return
  }
  func.func @transform_0(%arg0: i32) -> (i32, i32) {
    %c0_i32 = arith.constant 0 : i32
    %c0_i32_0 = arith.constant 0 : i32
    return %arg0, %c0_i32 : i32, i32
  }
  func.func @transform_1(%arg0: i32) -> (i32, i32) {
    %c0_i32 = arith.constant 0 : i32
    %c0_i32_0 = arith.constant 0 : i32
    %c0_i32_1 = arith.constant 0 : i32
    return %c0_i32, %c0_i32_0 : i32, i32
  }
  func.func @transform_2(%arg0: i32) -> (i32, i32) {
    %c0_i32 = arith.constant 0 : i32
    %c0_i32_0 = arith.constant 0 : i32
    %c0_i32_1 = arith.constant 0 : i32
    return %c0_i32, %c0_i32_0 : i32, i32
  }
  func.func @transform_3(%arg0: i32) -> (i32, i32) {
    %c0_i32 = arith.constant 0 : i32
    %c0_i32_0 = arith.constant 0 : i32
    %c0_i32_1 = arith.constant 0 : i32
    return %c0_i32, %c0_i32_0 : i32, i32
  }
  func.func @transform_4(%arg0: i32) -> (i32, i32) {
    %c0_i32 = arith.constant 0 : i32
    %c0_i32_0 = arith.constant 0 : i32
    %c0_i32_1 = arith.constant 0 : i32
    return %c0_i32, %c0_i32_0 : i32, i32
  }
  func.func @transform_5(%arg0: i32) -> (i32, i32) {
    %c0_i32 = arith.constant 0 : i32
    %c0_i32_0 = arith.constant 0 : i32
    return %arg0, %c0_i32 : i32, i32
  }
}

</mosaic_0001>

<bundles_post_ra>
// kernel: tpu_custom_call.1
= control target key start
LH: loop header
LB: loop body
LE: loop exit
PB: predicated region body
PF: predicated region fallthrough
CT: control target
= control target key end

     0   :  { %s1420_s0 = inlined_call_operand.hbm [shape: f32[512,128], index: 0, kind: input, shape index: {}]   ;;  %s1421_s1 = inlined_call_operand.hbm [shape: f32[128,256], index: 1, kind: input, shape index: {}]   ;;  %s1422_s2 = inlined_call_operand.vmem [shape: f32[1,256], index: 2, kind: input, shape index: {}]   ;;  %s1423_s3 = inlined_call_operand.vmem [shape: f32[1,128], index: 3, kind: input, shape index: {}]   ;;  %s1424_s4 = inlined_call_operand.<no memory space> [shape: f32[1,1], index: 4, kind: input, shape index: {}]   ;;  %s1425_s5 = inlined_call_operand.vmem [shape: f32[512,1], index: 5, kind: output, shape index: {}]  }
   0x1   :  { %v10_v0 = vstv %s1424_s4 }
   0x2   :  { %11 = vst [vmem:[#allocation2] sm:$0x1] %v10_v0 }
   0x3   :  { %12 = vsyncpa [#allocation4], 0 }
   0x4   :  { %14 = vsyncpa [#allocation4 + $0x1], 0 }
   0x5   :  { %15 = vsyncpa [#allocation6], 0  ;;  %s1136_s20 = smov 0   ;;  %s1138_s21 = smov 0  }
   0x6   :  { %s1140_s22 = smov 0   ;;  %s1142_s23 = smov 0  }
   0x7 LB: > { %s785_s4 = sadd.s32 4294967295, %s1094_s23   ;;  %p41_p0 = scmp.ne.s32.totalorder %s1086_s21, %s1082_s20  ;;  %s1094_s23 = sphi %s1142_s23, %s1441_s23   ;;  %s1090_s22 = sphi %s1140_s22, %s1440_s22   ;;  %s1086_s21 = sphi %s1138_s21, %s1439_s21   ;;  %s1082_s20 = sphi %s1136_s20, %s1438_s20  }
   0x8   : > { %p1158_p1 = scmp.eq.s32.totalorder %s785_s4, 0  ;;  %p787_p2 = scmp.ge.s32.totalorder %s1094_s23, 1 }
   0x9   : > { %p162_p3 = scmp.lt.s32.totalorder %s1094_s23, 5  ;;  %s1096_s27 = smov [#allocation5]  }
   0xa   : > { %s1430_s24 = scalar_select %p1158_p1, 1, 0 }
   0xb   : > { %p1166_p4 = por %p1158_p1, %p41_p0  ;;  %p1170_p5 = pnand %p787_p2, %p162_p3 }
   0xc   : > { %s174_s28 = sshll.u32 %s1096_s27, 4  ;;  %s1183_s30 = sadd.s32 1, %s1094_s23   ;;  %s175_s28 = int_to_ptr.vmem [resolvable:$true] %s174_s28 }
   0xd   : > { %s1431_s25 = scalar_select %p1166_p4, 1, 0 }
   0xe   : > { %s1432_s26 = scalar_select %p1170_p5, 1, 0 }
   0xf   : > { %p857_p6 = pneg %p1170_p5  ;;  %s28_s6 = sadd.s32 1, %s1090_s22 }
  0x10   : > { %s25_s7 = ssub.s32 %s1094_s23, %s1183_s30  ;;  %s1013_s8 = scalar_lea.vmem %s175_s28, 4096 }
  0x11   : > { %p1178_p7 = pnand %p857_p6, %p1158_p1  ;;  %p1014_p9 = scmp.ne.s32.totalorder %s175_s28, %s1013_s8 }
  0x12   : > { %p1021_p12 = scmp.lt.s32.totalorder %s175_s28, %s175_s28  ;;  %p1022_p13 = scmp.lt.s32.totalorder %s1013_s8, %s1013_s8 }
  0x13   : > { %p1004_p8 = pneg %p1178_p7 }
  0x14   : > { %p1023_p0 = por %p1022_p13, %p1021_p12 }
  0x15   : > { %p1016_p10 = pnand %p1014_p9, %p1004_p8 }
  0x17   : > { %p1017_p11 = pneg %p1016_p10 }
  0x19   : > { %p1024_p2 = pnand %p1023_p0, %p1017_p11 }
  0x1b   : > { %1027 = shalt.err (!%p1024_p2)
}
  0x1c   : > { %s1097_s9 = smov 256   ;;  %s1098_s10 = smov 16  }
  0x1d   : > { %860 = dma.hbm_to_vmem [thread:$0]  (!%p1178_p7), %s1421_s1, 4096, %s175_s28, [#allocation6], %s1097_s9, %s1097_s9, %s1098_s10  }
  0x1e   : > { %p26_p3 = scmp.eq.s32.totalorder %s25_s7, 0  ;;  %p35_p6 = scmp.ne.s32.totalorder %s1090_s22, %s1086_s21 }
  0x1f   : > { %p36_p8 = scmp.eq.s32.totalorder %s1094_s23, 0  ;;  %p866_p9 = scmp.lt.s32.totalorder %s1094_s23, 4 }
  0x20   : > { %s1200_s13 = scalar_select %p26_p3, %s1090_s22, %s28_s6  }
  0x21   : > { %p37_p10 = por %p36_p8, %p35_p6  ;;  %s197_s14 = sand.u32 1, %s1090_s22  }
  0x22   : > { %s790_s15 = sshll.u32 %s197_s14, 7  ;;  %s818_s16 = sshll.u32 %s1094_s23, 11 }
  0x23   : > { %s1207_s19 = scalar_lea.hbm %s1420_s0, %s818_s16  ;;  %s201_s20 = scalar_lea.vmem [#allocation3], %s790_s15 }
  0x24   : > { %s208_s27 = sshll.u32 %s201_s20, 4  ;;  %p1211_p7 = pnand %p866_p9, %p37_p10  ;;  %s1209_s27 = int_to_ptr.vmem [resolvable:$true] %s208_s27 }
  0x25   : > { %s1215_s29 = scalar_lea.sflag [#allocation4], %s197_s14  ;;  %s1028_s6 = scalar_lea.hbm %s1207_s19, 2048 }
  0x26   : > { %p1029_p11 = scmp.ne.s32.totalorder %s1207_s19, %s1028_s6  ;;  %p1030_p12 = pneg %p1211_p7 }
  0x27   : > { %s1033_s9 = scalar_lea.hbm %s1420_s0, 8192  ;;  %p1034_p2 = scmp.lt.s32.totalorder %s1207_s19, %s1420_s0 }
  0x28   : > { %p1031_p13 = pnand %p1030_p12, %p1029_p11  ;;  %p1035_p3 = scmp.lt.s32.totalorder %s1033_s9, %s1028_s6 }
  0x2a   : > { %p1032_p0 = pneg %p1031_p13  ;;  %p1036_p6 = por %p1035_p3, %p1034_p2 }
  0x2c   : > { %p1037_p8 = pnand %p1036_p6, %p1032_p0 }
  0x2e   : > { %1040 = shalt.err (!%p1037_p8)
}
  0x2f   : > { %s1041_s12 = scalar_lea.vmem %s1209_s27, 2048  ;;  %s1099_s14 = smov [#allocation3]  }
  0x30   : > { %p1042_p9 = scmp.ne.s32.totalorder %s1209_s27, %s1041_s12  ;;  %s1046_s15 = sshll.u32 %s1099_s14, 4  ;;  %s1047_s15 = int_to_ptr.vmem [resolvable:$false] %s1046_s15 }
  0x31   : > { %s1048_s16 = scalar_lea.vmem %s1047_s15, 4096  ;;  %p1049_p13 = scmp.lt.s32.totalorder %s1209_s27, %s1047_s15 }
  0x32   : > { %p1044_p10 = pnand %p1042_p9, %p1030_p12  ;;  %p1050_p1 = scmp.lt.s32.totalorder %s1048_s16, %s1041_s12 }
  0x34   : > { %p1045_p11 = pneg %p1044_p10  ;;  %p1051_p4 = por %p1050_p1, %p1049_p13 }
  0x36   : > { %p1052_p5 = pnand %p1051_p4, %p1045_p11 }
  0x38   : > { %1055 = shalt.err (!%p1052_p5)
}
  0x39   : > { %s1100_s17 = smov 128   ;;  %s1101_s18 = smov 8  }
  0x3a   : > { %864 = dma.hbm_to_vmem [thread:$0]  (!%p1211_p7), %s1207_s19, 2048, %s1209_s27, %s1215_s29, %s1100_s17, %s1100_s17, %s1101_s18  }
  0x3b   : > { %p1435_p12 = scmp.ne.s32.totalorder %s1432_s26, 0 }
  0x3c   : > { %s222_s20 = sand.u32 (!%p1435_p12), 1, %s1086_s21   ;;  %p1436_p1 = scmp.ne.s32.totalorder (!%p1435_p12), %s1431_s25, 0 }
  0x3d   : > { %220 = sbr.rel (%p1435_p12) target bundleno = 519 (0x207), region = 40  ;;  %s794_s6 = sshll.u32 (!%p1435_p12), %s222_s20, 7 }
  0x3e   : > { %s223_s7 = scalar_lea.sflag (!%p1435_p12), [#allocation4], %s222_s20  ;;  %s1239_s8 = scalar_lea.vmem (!%p1435_p12), [#allocation3], %s794_s6 }
  0x42   : > { %1073 = dma.done.wait (%p1436_p1), %s223_s7, 2048  }
  0x43   : > { %1075 = vsyncadd (%p1436_p1), %s223_s7, 4294965248  ;;  %p1437_p4 = scmp.ne.s32.totalorder %s1430_s24, 0 }
  0x45   : > { %1077 = dma.done.wait (%p1437_p4), [#allocation6], 4096  }
  0x46   : > { %1079 = vsyncadd (%p1437_p4), [#allocation6], 4294963200  ;;  %v1102_v1 = vmov 0.0   ;;  %v311_v2 = vld [vmem:[#allocation5 + $0xf8] sm:$0xff]  ;;  %v310_v3 = vld [vmem:[#allocation5 + $0xf0] sm:$0xff]  ;;  %v314_v50 = vlaneseq  ;;  %s796_s27 = sshll.u32 %s785_s4, 4 }
  0x47   : > { %388 = vmatprep.mubr.f32.mxu0 %v1102_v1  ;;  %436 = vmatprep.mubr.f32.mxu1 %v1102_v1  ;;  %v309_v4 = vld [vmem:[#allocation5 + $0xe8] sm:$0xff]  ;;  %v308_v5 = vld [vmem:[#allocation5 + $0xe0] sm:$0xff]  ;;  %v307_v6 = vld [vmem:[#allocation5 + $0xd8] sm:$0xff]  ;;  %p259_p5 = scmp.lt.s32.totalorder %s796_s27, 63  ;;  %vm691_vm0 = vcmask 7168  }
  0x48   : > { %324 = vmatprep.subr.mxu0 %v311_v2  ;;  %819 = vmatprep.subr.mxu1 %v311_v2  ;;  %v306_v7 = vld [vmem:[#allocation5 + $0xd0] sm:$0xff]  ;;  %v305_v8 = vld [vmem:[#allocation5 + $0xc8] sm:$0xff]  ;;  %v304_v9 = vld [vmem:[#allocation5 + $0xc0] sm:$0xff]  ;;  %v315_v51 = vshrl.u32 %v314_v50, 7 }
  0x49   : > { %325 = vmatpush1.msra.mxu0 %v310_v3  ;;  %835 = vmatpush1.msra.mxu1 %v310_v3  ;;  %v303_v10 = vld [vmem:[#allocation5 + $0xb8] sm:$0xff]  ;;  %v302_v11 = vld [vmem:[#allocation5 + $0xb0] sm:$0xff]  ;;  %v301_v12 = vld [vmem:[#allocation5 + $0xa8] sm:$0xff]  ;;  %s1443_s27 = smov (!%p259_p5, %s796_s27), 63 }
  0x4a   : > { %326 = vmatprep.subr.mxu0 %v309_v4  ;;  %820 = vmatprep.subr.mxu1 %v309_v4  ;;  %v300_v13 = vld [vmem:[#allocation5 + $0xa0] sm:$0xff]  ;;  %v299_v14 = vld [vmem:[#allocation5 + $0x98] sm:$0xff]  ;;  %v298_v15 = vld [vmem:[#allocation5 + $0x90] sm:$0xff]  ;;  %v320_v52 = vsub.s32 1, %v315_v51  ;;  %v316_v57 = vsub.s32 0, %v315_v51  ;;  %s797_s28 = sshll.u32 %s1443_s27, 3 }
  0x4b   : > { %327 = vmatpush1.msra.mxu0 %v308_v5  ;;  %836 = vmatpush1.msra.mxu1 %v308_v5  ;;  %v297_v16 = vld [vmem:[#allocation5 + $0x88] sm:$0xff]  ;;  %v296_v17 = vld [vmem:[#allocation5 + $0x80] sm:$0xff]  ;;  %v295_v18 = vld [vmem:[#allocation5 + $0x78] sm:$0xff]  ;;  %s1373_s10 = scalar_lea.vmem %s1425_s5, %s797_s28 }
  0x4c   : > { %328 = vmatprep.subr.mxu0 %v307_v6  ;;  %821 = vmatprep.subr.mxu1 %v307_v6  ;;  %v294_v19 = vld [vmem:[#allocation5 + $0x70] sm:$0xff]  ;;  %v293_v20 = vld [vmem:[#allocation5 + $0x68] sm:$0xff]  ;;  %v292_v21 = vld [vmem:[#allocation5 + $0x60] sm:$0xff] }
  0x4d   : > { %329 = vmatpush1.msra.mxu0 %v306_v7  ;;  %837 = vmatpush1.msra.mxu1 %v306_v7  ;;  %v291_v22 = vld [vmem:[#allocation5 + $0x58] sm:$0xff]  ;;  %v290_v23 = vld [vmem:[#allocation5 + $0x50] sm:$0xff]  ;;  %v289_v24 = vld [vmem:[#allocation5 + $0x48] sm:$0xff] }
  0x4e   : > { %330 = vmatprep.subr.mxu0 %v305_v8  ;;  %822 = vmatprep.subr.mxu1 %v305_v8  ;;  %v288_v25 = vld [vmem:[#allocation5 + $0x40] sm:$0xff]  ;;  %v287_v26 = vld [vmem:[#allocation5 + $0x38] sm:$0xff]  ;;  %v286_v27 = vld [vmem:[#allocation5 + $0x30] sm:$0xff] }
  0x4f   : > { %331 = vmatpush1.msra.mxu0 %v304_v9  ;;  %838 = vmatpush1.msra.mxu1 %v304_v9  ;;  %v285_v28 = vld [vmem:[#allocation5 + $0x28] sm:$0xff]  ;;  %v284_v29 = vld [vmem:[#allocation5 + $0x20] sm:$0xff]  ;;  %v283_v30 = vld [vmem:[#allocation5 + $0x18] sm:$0xff] }
  0x50   : > { %332 = vmatprep.subr.mxu0 %v303_v10  ;;  %823 = vmatprep.subr.mxu1 %v303_v10  ;;  %v282_v31 = vld [vmem:[#allocation5 + $0x10] sm:$0xff]  ;;  %v281_v32 = vld [vmem:[#allocation5 + $0x8] sm:$0xff]  ;;  %v280_v33 = vld [vmem:[#allocation5] sm:$0xff] }
  0x51   : > { %333 = vmatpush1.msra.mxu0 %v302_v11  ;;  %839 = vmatpush1.msra.mxu1 %v302_v11  ;;  %v264_v34 = vld [vmem:[%s1239_s8] sm:$0xff]  ;;  %v265_v36 = vld [vmem:[%s1239_s8 + $0x8] sm:$0xff]  ;;  %v266_v38 = vld [vmem:[%s1239_s8 + $0x10] sm:$0xff] }
  0x52   : > { %334 = vmatprep.subr.mxu0 %v301_v12  ;;  %824 = vmatprep.subr.mxu1 %v301_v12  ;;  %v272_v35 = vld [vmem:[%s1239_s8 + $0x40] sm:$0xff]  ;;  %v273_v37 = vld [vmem:[%s1239_s8 + $0x48] sm:$0xff]  ;;  %v274_v39 = vld [vmem:[%s1239_s8 + $0x50] sm:$0xff] }
  0x53   : > { %335 = vmatpush1.msra.mxu0 %v300_v13  ;;  %840 = vmatpush1.msra.mxu1 %v300_v13  ;;  %v267_v40 = vld [vmem:[%s1239_s8 + $0x18] sm:$0xff]  ;;  %v268_v42 = vld [vmem:[%s1239_s8 + $0x20] sm:$0xff]  ;;  %v269_v44 = vld [vmem:[%s1239_s8 + $0x28] sm:$0xff] }
  0x54   : > { %336 = vmatprep.subr.mxu0 %v299_v14  ;;  %825 = vmatprep.subr.mxu1 %v299_v14  ;;  %v275_v41 = vld [vmem:[%s1239_s8 + $0x58] sm:$0xff]  ;;  %v276_v43 = vld [vmem:[%s1239_s8 + $0x60] sm:$0xff]  ;;  %v277_v45 = vld [vmem:[%s1239_s8 + $0x68] sm:$0xff] }
  0x55   : > { %337 = vmatpush1.msra.mxu0 %v298_v15  ;;  %841 = vmatpush1.msra.mxu1 %v298_v15  ;;  %v270_v46 = vld [vmem:[%s1239_s8 + $0x30] sm:$0xff]  ;;  %v271_v48 = vld [vmem:[%s1239_s8 + $0x38] sm:$0xff] }
  0x56   : > { %338 = vmatprep.subr.mxu0 %v297_v16  ;;  %826 = vmatprep.subr.mxu1 %v297_v16  ;;  %v278_v47 = vld [vmem:[%s1239_s8 + $0x70] sm:$0xff]  ;;  %v279_v49 = vld [vmem:[%s1239_s8 + $0x78] sm:$0xff] }
  0x57   : > { %339 = vmatpush1.msra.mxu0 %v296_v17  ;;  %842 = vmatpush1.msra.mxu1 %v296_v17  ;;  %v312_v53 = vld [vmem:[%s1422_s2] sm:$0x3] }
  0x58   : > { %340 = vmatprep.subr.mxu0 %v295_v18  ;;  %827 = vmatprep.subr.mxu1 %v295_v18  ;;  %v1284_v54 = vrot.slane %v312_v53, %v320_v52  ;;  %v1288_v2 = vrot.slane %v312_v53, %v316_v57 }
  0x59   : > { %341 = vmatpush1.msra.mxu0 %v294_v19  ;;  %843 = vmatpush1.msra.mxu1 %v294_v19 }
  0x5a   : > { %342 = vmatprep.subr.mxu0 %v293_v20  ;;  %828 = vmatprep.subr.mxu1 %v293_v20 }
  0x5b   : > { %343 = vmatpush1.msra.mxu0 %v292_v21  ;;  %844 = vmatpush1.msra.mxu1 %v292_v21 }
  0x5c   : > { %344 = vmatprep.subr.mxu0 %v291_v22  ;;  %829 = vmatprep.subr.mxu1 %v291_v22 }
  0x5d   : > { %345 = vmatpush1.msra.mxu0 %v290_v23  ;;  %845 = vmatpush1.msra.mxu1 %v290_v23 }
  0x5e   : > { %346 = vmatprep.subr.mxu0 %v289_v24  ;;  %830 = vmatprep.subr.mxu1 %v289_v24 }
  0x5f   : > { %347 = vmatpush1.msra.mxu0 %v288_v25  ;;  %846 = vmatpush1.msra.mxu1 %v288_v25 }
  0x60   : > { %348 = vmatprep.subr.mxu0 %v287_v26  ;;  %831 = vmatprep.subr.mxu1 %v287_v26 }
  0x61   : > { %349 = vmatpush1.msra.mxu0 %v286_v27  ;;  %847 = vmatpush1.msra.mxu1 %v286_v27 }
  0x62   : > { %350 = vmatprep.subr.mxu0 %v285_v28  ;;  %832 = vmatprep.subr.mxu1 %v285_v28 }
  0x63   : > { %351 = vmatpush1.msra.mxu0 %v284_v29  ;;  %848 = vmatpush1.msra.mxu1 %v284_v29 }
  0x64   : > { %352 = vmatprep.subr.mxu0 %v283_v30  ;;  %833 = vmatprep.subr.mxu1 %v283_v30 }
  0x65   : > { %353 = vmatpush1.msra.mxu0 %v282_v31  ;;  %849 = vmatpush1.msra.mxu1 %v282_v31 }
  0x66   : > { %354 = vmatprep.subr.mxu0 %v281_v32  ;;  %834 = vmatprep.subr.mxu1 %v281_v32 }
  0x67   : > { %355 = vmatpush1.msra.mxu0 %v280_v33  ;;  %850 = vmatpush1.msra.mxu1 %v280_v33 }
  0x68   : > { %389 = vmatmul.mubr.f32.vlgmr.msra.gmra.mxu0 %v264_v34  ;;  %437 = vmatmul.mubr.f32.vlgmr.msra.gmra.mxu1 %v272_v35 }
  0x69   : > { %394 = vmatprep.mubr.f32.mxu0 %v1102_v1  ;;  %442 = vmatprep.mubr.f32.mxu1 %v1102_v1 }
  0x6c   : > { %395 = vmatmul.mubr.f32.gmra.mxu0 %v265_v36  ;;  %443 = vmatmul.mubr.f32.gmra.mxu1 %v273_v37 }
  0x6d   : > { %400 = vmatprep.mubr.f32.mxu0 %v1102_v1  ;;  %448 = vmatprep.mubr.f32.mxu1 %v1102_v1 }
  0x70   : > { %401 = vmatmul.mubr.f32.gmra.mxu0 %v266_v38  ;;  %449 = vmatmul.mubr.f32.gmra.mxu1 %v274_v39 }
  0x71   : > { %406 = vmatprep.mubr.f32.mxu0 %v1102_v1  ;;  %454 = vmatprep.mubr.f32.mxu1 %v1102_v1 }
  0x74   : > { %407 = vmatmul.mubr.f32.gmra.mxu0 %v267_v40  ;;  %455 = vmatmul.mubr.f32.gmra.mxu1 %v275_v41 }
  0x75   : > { %412 = vmatprep.mubr.f32.mxu0 %v1102_v1  ;;  %460 = vmatprep.mubr.f32.mxu1 %v1102_v1 }
  0x78   : > { %413 = vmatmul.mubr.f32.gmra.mxu0 %v268_v42  ;;  %461 = vmatmul.mubr.f32.gmra.mxu1 %v276_v43 }
  0x79   : > { %418 = vmatprep.mubr.f32.mxu0 %v1102_v1  ;;  %466 = vmatprep.mubr.f32.mxu1 %v1102_v1 }
  0x7c   : > { %419 = vmatmul.mubr.f32.gmra.mxu0 %v269_v44  ;;  %467 = vmatmul.mubr.f32.gmra.mxu1 %v277_v45 }
  0x7d   : > { %424 = vmatprep.mubr.f32.mxu0 %v1102_v1  ;;  %472 = vmatprep.mubr.f32.mxu1 %v1102_v1 }
  0x80   : > { %425 = vmatmul.mubr.f32.gmra.mxu0 %v270_v46  ;;  %473 = vmatmul.mubr.f32.gmra.mxu1 %v278_v47 }
  0x81   : > { %430 = vmatprep.mubr.f32.mxu0 %v1102_v1  ;;  %478 = vmatprep.mubr.f32.mxu1 %v1102_v1 }
  0x84   : > { %431 = vmatmul.mubr.f32.gmra.mxu0 %v271_v48  ;;  %479 = vmatmul.mubr.f32.gmra.mxu1 %v279_v49 }
 0x128   : > { %v390_v55 = vpop.f32.mrf.mxu0  ;;  %v438_v56 = vpop.f32.mrf.mxu1 }
 0x129   : > { %v391_v11 = vadd.f32 %v390_v55, %v1288_v2  ;;  %v439_v18 = vadd.f32 %v438_v56, %v1288_v2 }
 0x12a   : > { %v392_v58 = vpop.f32.mrf.mxu0  ;;  %v440_v59 = vpop.f32.mrf.mxu1 }
 0x12b   : > { %v393_v60 = vadd.f32 %v392_v58, %v1284_v54  ;;  %v441_v61 = vadd.f32 %v440_v59, %v1284_v54 }
 0x12c   : > { %v396_v62 = vpop.f32.mrf.mxu0  ;;  %v444_v63 = vpop.f32.mrf.mxu1 }
 0x12d   : > { %v798_v0 = vmul.f32 -1.442695, %v393_v60  ;;  %v806_v1 = vmul.f32 -1.442695, %v441_v61  ;;  %v397_v21 = vadd.f32 %v396_v62, %v1288_v2  ;;  %v445_v28 = vadd.f32 %v444_v63, %v1288_v2 }
 0x12e   : > { %v398_v3 = vpop.f32.mrf.mxu0  ;;  %v446_v4 = vpop.f32.mrf.mxu1 }
 0x12f   : > { %906 = vpow2.f32 %v798_v0  ;;  %v399_v5 = vadd.f32 %v398_v3, %v1284_v54  ;;  %v447_v6 = vadd.f32 %v446_v4, %v1284_v54 }
 0x130   : > { %908 = vpow2.f32 %v806_v1  ;;  %v402_v7 = vpop.f32.mrf.mxu0  ;;  %v450_v8 = vpop.f32.mrf.mxu1 }
 0x131   : > { %v799_v9 = vmul.f32 -1.442695, %v399_v5  ;;  %v807_v10 = vmul.f32 -1.442695, %v447_v6  ;;  %v403_v31 = vadd.f32 %v402_v7, %v1288_v2  ;;  %v451_v51 = vadd.f32 %v450_v8, %v1288_v2 }
 0x132   : > { %v404_v12 = vpop.f32.mrf.mxu0  ;;  %v452_v13 = vpop.f32.mrf.mxu1 }
 0x133   : > { %910 = vpow2.f32 %v799_v9  ;;  %v405_v14 = vadd.f32 %v404_v12, %v1284_v54  ;;  %v453_v15 = vadd.f32 %v452_v13, %v1284_v54 }
 0x134   : > { %912 = vpow2.f32 %v807_v10  ;;  %v408_v16 = vpop.f32.mrf.mxu0  ;;  %v1295_v17 = vpop.f32.mrf.mxu1 }
 0x135   : > { %v800_v19 = vmul.f32 -1.442695, %v405_v14  ;;  %v808_v20 = vmul.f32 -1.442695, %v453_v15  ;;  %914 = vtanh.f32 %v391_v11  ;;  %v409_v55 = vadd.f32 %v408_v16, %v1288_v2 }
 0x136   : > { %v410_v22 = vpop.f32.mrf.mxu0  ;;  %v458_v23 = vpop.f32.mrf.mxu1  ;;  %v457_v11 = vadd.f32 %v1295_v17, %v1288_v2  ;;  %v1334_v17 = vld [vmem:[%s1423_s3] ss:$0 sm:$0xff] }
 0x137   : > { %916 = vpow2.f32 %v800_v19  ;;  %v411_v24 = vadd.f32 %v410_v22, %v1284_v54  ;;  %v459_v25 = vadd.f32 %v458_v23, %v1284_v54 }
 0x138   : > { %918 = vpow2.f32 %v808_v20  ;;  %v1301_v26 = vpop.f32.mrf.mxu0  ;;  %v1303_v27 = vpop.f32.mrf.mxu1 }
 0x139   : > { %920 = vtanh.f32 %v439_v18  ;;  %v801_v29 = vmul.f32 -1.442695, %v411_v24  ;;  %v809_v30 = vmul.f32 -1.442695, %v459_v25  ;;  %v415_v15 = vadd.f32 %v1301_v26, %v1288_v2 }
 0x13a   : > { %922 = vtanh.f32 %v397_v21  ;;  %v416_v32 = vpop.f32.mrf.mxu0  ;;  %v464_v33 = vpop.f32.mrf.mxu1 }
 0x13b   : > { %924 = vpow2.f32 %v801_v29  ;;  %v417_v34 = vadd.f32 %v416_v32, %v1284_v54  ;;  %v465_v35 = vadd.f32 %v464_v33, %v1284_v54 }
 0x13c   : > { %v907_v36 = vpop.eup %906  ;;  %926 = vpow2.f32 %v809_v30  ;;  %v1309_v37 = vpop.f32.mrf.mxu0 }
 0x13d   : > { %v1311_v38 = vpop.f32.mrf.mxu1  ;;  %v909_v39 = vpop.eup %908  ;;  %v549_v40 = vadd.f32 1.0, %v907_v36  ;;  %928 = vtanh.f32 %v445_v28  ;;  %v802_v41 = vmul.f32 -1.442695, %v417_v34  ;;  %v810_v43 = vmul.f32 -1.442695, %v465_v35 }
 0x13e   : > { %v557_v42 = vadd.f32 1.0, %v909_v39  ;;  %930 = vtanh.f32 %v403_v31  ;;  %v422_v44 = vpop.f32.mrf.mxu0  ;;  %v463_v28 = vadd.f32 %v1303_v27, %v1288_v2 }
 0x13f   : > { %v470_v45 = vpop.f32.mrf.mxu1  ;;  %932 = vrcp.f32 %v549_v40  ;;  %v423_v52 = vadd.f32 %v422_v44, %v1284_v54 }
 0x140   : > { %v911_v46 = vpop.eup %910  ;;  %934 = vrcp.f32 %v557_v42  ;;  %v1313_v47 = vpop.f32.mrf.mxu0  ;;  %v471_v56 = vadd.f32 %v470_v45, %v1284_v54  ;;  %v421_v45 = vadd.f32 %v1309_v37, %v1288_v2 }
 0x141   : > { %v1315_v48 = vpop.f32.mrf.mxu1  ;;  %v913_v49 = vpop.eup %912  ;;  %v550_v50 = vadd.f32 1.0, %v911_v46  ;;  %936 = vpow2.f32 %v802_v41  ;;  %v803_v63 = vmul.f32 -1.442695, %v423_v52  ;;  %v469_v52 = vadd.f32 %v1311_v38, %v1288_v2 }
 0x142   : > { %v558_v53 = vadd.f32 1.0, %v913_v49  ;;  %938 = vpow2.f32 %v810_v43  ;;  %v428_v57 = vpop.f32.mrf.mxu0  ;;  %v915_v58 = vpop.eup %914  ;;  %v811_v3 = vmul.f32 -1.442695, %v471_v56  ;;  %v427_v38 = vadd.f32 %v1313_v47, %v1288_v2 }
 0x143   : > { %940 = vrcp.f32 %v550_v50  ;;  %v476_v59 = vpop.f32.mrf.mxu1  ;;  %v429_v6 = vadd.f32 %v428_v57, %v1284_v54 }
 0x144   : > { %v917_v60 = vpop.eup %916  ;;  %942 = vrcp.f32 %v558_v53  ;;  %v1321_v4 = vpop.f32.mrf.mxu0  ;;  %v477_v9 = vadd.f32 %v476_v59, %v1284_v54 }
 0x145   : > { %v919_v61 = vpop.eup %918  ;;  %944 = vtanh.f32 %v451_v51  ;;  %v551_v62 = vadd.f32 1.0, %v917_v60  ;;  %v1324_v7 = vpop.f32.mrf.mxu1  ;;  %v804_v19 = vmul.f32 -1.442695, %v429_v6 }
 0x146   : > { %v921_v0 = vpop.eup %920  ;;  %v559_v1 = vadd.f32 1.0, %v919_v61  ;;  %946 = vtanh.f32 %v409_v55  ;;  %v434_v16 = vpop.f32.mrf.mxu0  ;;  %v812_v22 = vmul.f32 -1.442695, %v477_v9 }
 0x147   : > { %v923_v5 = vpop.eup %922  ;;  %948 = vrcp.f32 %v551_v62  ;;  %v482_v20 = vpop.f32.mrf.mxu1  ;;  %v435_v24 = vadd.f32 %v434_v16, %v1284_v54 }
 0x148   : > { %v925_v8 = vpop.eup %924  ;;  %950 = vrcp.f32 %v559_v1  ;;  %v483_v29 = vadd.f32 %v482_v20, %v1284_v54  ;;  %v481_v20 = vadd.f32 %v1324_v7, %v1288_v2 }
 0x149   : > { %v927_v10 = vpop.eup %926  ;;  %v552_v12 = vadd.f32 1.0, %v925_v8  ;;  %952 = vpow2.f32 %v803_v63  ;;  %v805_v39 = vmul.f32 -1.442695, %v435_v24  ;;  %v475_v8 = vadd.f32 %v1315_v48, %v1288_v2 }
 0x14a   : > { %v929_v13 = vpop.eup %928  ;;  %v560_v14 = vadd.f32 1.0, %v927_v10  ;;  %954 = vpow2.f32 %v811_v3  ;;  %v813_v41 = vmul.f32 -1.442695, %v483_v29 }
 0x14b   : > { %v931_v18 = vpop.eup %930  ;;  %956 = vrcp.f32 %v552_v12 }
 0x14c   : > { %v933_v21 = vpop.eup %932  ;;  %958 = vrcp.f32 %v560_v14  ;;  %v433_v14 = vadd.f32 %v1321_v4, %v1288_v2 }
 0x14d   : > { %v935_v23 = vpop.eup %934  ;;  %960 = vtanh.f32 %v457_v11  ;;  %v597_v25 = vmul.f32 %v933_v21, %v915_v58 }
 0x14e   : > { %v937_v26 = vpop.eup %936  ;;  %962 = vtanh.f32 %v415_v15  ;;  %v605_v33 = vmul.f32 %v935_v23, %v921_v0 }
 0x14f   : > { %v939_v30 = vpop.eup %938  ;;  %v553_v31 = vadd.f32 1.0, %v937_v26  ;;  %964 = vpow2.f32 %v804_v19  ;;  %v620_v32 = vmul.f32 %v1334_v17, %v597_v25 }
 0x150   : > { %v941_v34 = vpop.eup %940  ;;  %v561_v35 = vadd.f32 1.0, %v939_v30  ;;  %966 = vpow2.f32 %v812_v22  ;;  %v628_v54 = vmul.f32 %v1334_v17, %v605_v33 }
 0x151   : > { %v943_v36 = vpop.eup %942  ;;  %968 = vrcp.f32 %v553_v31  ;;  %636 = vadd.xlane.f32.xlu0 %v620_v32  ;;  %v598_v43 = vmul.f32 %v941_v34, %v923_v5 }
 0x152   : > { %v945_v40 = vpop.eup %944  ;;  %970 = vrcp.f32 %v561_v35  ;;  %v606_v42 = vmul.f32 %v943_v36, %v929_v13 }
 0x153   : > { %v947_v27 = vpop.eup %946  ;;  %972 = vtanh.f32 %v463_v28  ;;  %v621_v57 = vmul.f32 %v1334_v17, %v598_v43 }
 0x154   : > { %v949_v44 = vpop.eup %948  ;;  %v629_v46 = vmul.f32 %v1334_v17, %v606_v42  ;;  %974 = vpow2.f32 %v805_v39 }
 0x155   : > { %v951_v49 = vpop.eup %950  ;;  %652 = vadd.xlane.f32.xlu0 %v628_v54  ;;  %v599_v50 = vmul.f32 %v949_v44, %v931_v18  ;;  %976 = vpow2.f32 %v813_v41 }
 0x156   : > { %v953_v51 = vpop.eup %952  ;;  %654 = vadd.xlane.f32.xlu1 %v629_v46  ;;  %v607_v58 = vmul.f32 %v951_v49, %v945_v40  ;;  %978 = vtanh.f32 %v421_v45  ;;  %v815_v46 = vld [vmem:[#allocation2] ss:$0 sm:$0xff] }
 0x157   : > { %v955_v53 = vpop.eup %954  ;;  %v554_v55 = vadd.f32 1.0, %v953_v51  ;;  %v622_v56 = vmul.f32 %v1334_v17, %v599_v50 }
 0x158   : > { %v957_v37 = vpop.eup %956  ;;  %v562_v59 = vadd.f32 1.0, %v955_v53  ;;  %v630_v1 = vmul.f32 %v1334_v17, %v607_v58 }
 0x159   : > { %v959_v60 = vpop.eup %958  ;;  %980 = vrcp.f32 %v554_v55  ;;  %638 = vadd.xlane.f32.xlu0 %v621_v57  ;;  %v600_v61 = vmul.f32 %v957_v37, %v947_v27 }
 0x15a   : > { %v961_v62 = vpop.eup %960  ;;  %982 = vrcp.f32 %v562_v59  ;;  %640 = vadd.xlane.f32.xlu1 %v622_v56 }
 0x15b   : > { %v963_v63 = vpop.eup %962  ;;  %984 = vtanh.f32 %v469_v52  ;;  %v623_v0 = vmul.f32 %v1334_v17, %v600_v61  ;;  %v608_v5 = vmul.f32 %v961_v62, %v959_v60 }
 0x15c   : > { %v965_v3 = vpop.eup %964  ;;  %986 = vtanh.f32 %v427_v38 }
 0x15d   : > { %v967_v6 = vpop.eup %966  ;;  %v555_v9 = vadd.f32 1.0, %v965_v3  ;;  %656 = vadd.xlane.f32.xlu0 %v630_v1  ;;  %v631_v15 = vmul.f32 %v1334_v17, %v608_v5 }
 0x15e   : > { %v969_v10 = vpop.eup %968  ;;  %v563_v11 = vadd.f32 1.0, %v967_v6  ;;  %642 = vadd.xlane.f32.xlu1 %v623_v0 }
 0x15f   : > { %v971_v47 = vpop.eup %970  ;;  %988 = vrcp.f32 %v555_v9  ;;  %v601_v12 = vmul.f32 %v969_v10, %v963_v63 }
 0x160   : > { %v973_v13 = vpop.eup %972  ;;  %990 = vrcp.f32 %v563_v11 }
 0x161   : > { %992 = vtanh.f32 %v475_v8  ;;  %v624_v16 = vmul.f32 %v1334_v17, %v601_v12  ;;  %v609_v48 = vmul.f32 %v973_v13, %v971_v47  ;;  %v975_v18 = vpop.eup %974 }
 0x162   : > { %658 = vadd.xlane.f32.xlu1 %v631_v15  ;;  %v977_v19 = vpop.eup %976  ;;  %v556_v21 = vadd.f32 1.0, %v975_v18  ;;  %994 = vtanh.f32 %v433_v14 }
 0x163   : > { %644 = vadd.xlane.f32.xlu0 %v624_v16  ;;  %v564_v22 = vadd.f32 1.0, %v977_v19  ;;  %v979_v23 = vpop.eup %978  ;;  %v632_v4 = vmul.f32 %v1334_v17, %v609_v48 }
 0x164   : > { %996 = vrcp.f32 %v556_v21 }
 0x165   : > { %998 = vrcp.f32 %v564_v22 }
 0x166   : > { %v981_v24 = vpop.eup %980  ;;  %1000 = vtanh.f32 %v481_v20 }
 0x167   : > { %v983_v25 = vpop.eup %982  ;;  %v602_v26 = vmul.f32 %v981_v24, %v979_v23  ;;  %660 = vadd.xlane.f32.xlu0 %v632_v4 }
 0x168   : > { %v985_v28 = vpop.eup %984 }
 0x169   : > { %v625_v29 = vmul.f32 %v1334_v17, %v602_v26  ;;  %v610_v30 = vmul.f32 %v985_v28, %v983_v25  ;;  %v987_v31 = vpop.eup %986 }
 0x16b   : > { %646 = vadd.xlane.f32.xlu1 %v625_v29  ;;  %v633_v32 = vmul.f32 %v1334_v17, %v610_v30 }
 0x16c   : > { %v989_v2 = vpop.eup %988 }
 0x16d   : > { %v991_v7 = vpop.eup %990  ;;  %v603_v33 = vmul.f32 %v989_v2, %v987_v31 }
 0x16e   : > { %v993_v34 = vpop.eup %992 }
 0x16f   : > { %662 = vadd.xlane.f32.xlu1 %v633_v32  ;;  %v626_v35 = vmul.f32 %v1334_v17, %v603_v33  ;;  %v611_v36 = vmul.f32 %v993_v34, %v991_v7  ;;  %v995_v39 = vpop.eup %994 }
 0x171   : > { %648 = vadd.xlane.f32.xlu0 %v626_v35  ;;  %v997_v40 = vpop.eup %996  ;;  %v634_v27 = vmul.f32 %v1334_v17, %v611_v36 }
 0x172   : > { %v999_v41 = vpop.eup %998  ;;  %v604_v42 = vmul.f32 %v997_v40, %v995_v39 }
 0x173   : > { %v1001_v54 = vpop.eup %1000 }
 0x174   : > { %v627_v43 = vmul.f32 %v1334_v17, %v604_v42  ;;  %v612_v44 = vmul.f32 %v1001_v54, %v999_v41 }
 0x175   : > { %664 = vadd.xlane.f32.xlu0 %v634_v27 }
 0x176   : > { %650 = vadd.xlane.f32.xlu1 %v627_v43  ;;  %v635_v45 = vmul.f32 %v1334_v17, %v612_v44 }
 0x17a   : > { %666 = vadd.xlane.f32.xlu1 %v635_v45 }
 0x1da   : > { %v637_v49 = vpop.xlane.xlu0 %636 }
 0x1db   : > { %v675_v17 = vadd.f32 %v815_v46, %v637_v49 }
 0x1dd   : > { %692 = vst.msk [vmem:[%s1373_s10] sm:$0xff] %vm691_vm0, %v675_v17 }
 0x1de   : > { %v653_v50 = vpop.xlane.xlu0 %652 }
 0x1df   : > { %v655_v51 = vpop.xlane.xlu1 %654  ;;  %v683_v52 = vadd.f32 %v815_v46, %v653_v50 }
 0x1e0   : > { %v684_v53 = vadd.f32 %v815_v46, %v655_v51 }
 0x1e1   : > { %700 = vst.msk [vmem:[%s1373_s10 + $0x40] sm:$0xff] %vm691_vm0, %v683_v52 }
 0x1e2   : > { %701 = vst.msk [vmem:[%s1373_s10 + $0x48] sm:$0xff] %vm691_vm0, %v684_v53  ;;  %v639_v55 = vpop.xlane.xlu0 %638 }
 0x1e3   : > { %v641_v56 = vpop.xlane.xlu1 %640  ;;  %v676_v57 = vadd.f32 %v815_v46, %v639_v55 }
 0x1e4   : > { %v677_v58 = vadd.f32 %v815_v46, %v641_v56 }
 0x1e5   : > { %693 = vst.msk [vmem:[%s1373_s10 + $0x8] sm:$0xff] %vm691_vm0, %v676_v57 }
 0x1e6   : > { %694 = vst.msk [vmem:[%s1373_s10 + $0x10] sm:$0xff] %vm691_vm0, %v677_v58  ;;  %v657_v37 = vpop.xlane.xlu0 %656 }
 0x1e7   : > { %v643_v59 = vpop.xlane.xlu1 %642  ;;  %v685_v60 = vadd.f32 %v815_v46, %v657_v37 }
 0x1e8   : > { %v678_v61 = vadd.f32 %v815_v46, %v643_v59 }
 0x1e9   : > { %702 = vst.msk [vmem:[%s1373_s10 + $0x50] sm:$0xff] %vm691_vm0, %v685_v60 }
 0x1ea   : > { %695 = vst.msk [vmem:[%s1373_s10 + $0x18] sm:$0xff] %vm691_vm0, %v678_v61 }
 0x1eb   : > { %v659_v62 = vpop.xlane.xlu1 %658 }
 0x1ec   : > { %v686_v38 = vadd.f32 %v815_v46, %v659_v62  ;;  %v645_v63 = vpop.xlane.xlu0 %644 }
 0x1ed   : > { %v679_v0 = vadd.f32 %v815_v46, %v645_v63 }
 0x1ee   : > { %703 = vst.msk [vmem:[%s1373_s10 + $0x58] sm:$0xff] %vm691_vm0, %v686_v38 }
 0x1ef   : > { %696 = vst.msk [vmem:[%s1373_s10 + $0x20] sm:$0xff] %vm691_vm0, %v679_v0 }
 0x1f0   : > { %v661_v1 = vpop.xlane.xlu0 %660 }
 0x1f1   : > { %v687_v3 = vadd.f32 %v815_v46, %v661_v1 }
 0x1f3   : > { %704 = vst.msk [vmem:[%s1373_s10 + $0x60] sm:$0xff] %vm691_vm0, %v687_v3 }
 0x1f4   : > { %v647_v5 = vpop.xlane.xlu1 %646 }
 0x1f5   : > { %v680_v6 = vadd.f32 %v815_v46, %v647_v5 }
 0x1f7   : > { %697 = vst.msk [vmem:[%s1373_s10 + $0x28] sm:$0xff] %vm691_vm0, %v680_v6 }
 0x1f8   : > { %v663_v8 = vpop.xlane.xlu1 %662 }
 0x1f9   : > { %v688_v9 = vadd.f32 %v815_v46, %v663_v8 }
 0x1fa   : > { %v649_v10 = vpop.xlane.xlu0 %648 }
 0x1fb   : > { %705 = vst.msk [vmem:[%s1373_s10 + $0x68] sm:$0xff] %vm691_vm0, %v688_v9  ;;  %v681_v11 = vadd.f32 %v815_v46, %v649_v10 }
 0x1fd   : > { %698 = vst.msk [vmem:[%s1373_s10 + $0x30] sm:$0xff] %vm691_vm0, %v681_v11 }
 0x1fe   : > { %v665_v47 = vpop.xlane.xlu0 %664 }
 0x1ff   : > { %v689_v12 = vadd.f32 %v815_v46, %v665_v47  ;;  %v651_v13 = vpop.xlane.xlu1 %650 }
 0x200   : > { %v682_v14 = vadd.f32 %v815_v46, %v651_v13 }
 0x201   : > { %706 = vst.msk [vmem:[%s1373_s10 + $0x70] sm:$0xff] %vm691_vm0, %v689_v12 }
 0x202   : > { %699 = vst.msk [vmem:[%s1373_s10 + $0x38] sm:$0xff] %vm691_vm0, %v682_v14 }
 0x203   : > { %v667_v15 = vpop.xlane.xlu1 %666 }
 0x204   : > { %v690_v16 = vadd.f32 %v815_v46, %v667_v15 }
 0x206   : > { %707 = vst.msk [vmem:[%s1373_s10 + $0x78] sm:$0xff] %vm691_vm0, %v690_v16 }
 0x207 PF: > { %p18_p7 = scmp.ge.s32.totalorder %s1183_s30, 6   ;;  %s1438_s20 = smov %s1086_s21 }
 0x208   : > { %s1439_s21 = smov %s1090_s22  ;;  %s1440_s22 = smov %s1200_s13 }
 0x209   : > { %s1441_s23 = smov %s1183_s30  ;;  %20 = sbr.rel (!%p18_p7) target bundleno = 7 (0x7), region = 84 }
 0x20e   :  { %730 = vsyncpa [#allocation4], 1 }
 0x20f   :  { %732 = vsyncpa [#allocation4 + $0x1], 1 }
 0x210   :  { %733 = vsyncpa [#allocation6], 1 }

</bundles_post_ra>
